<compile_context>
chip_gen: v5e
topology: v5e:2x2
jax: 0.10.0
libtpu: 0.0.40
codegen_flags: <defaults>
</compile_context>

<pallas_src>
import functools

import jax
import jax.numpy as jnp
from jax.experimental import pallas as pl
from jax.experimental.pallas import tpu as pltpu


def _outconv_kernel(x_ref, w_ref, b_ref, o_ref):
    # x_ref: (1, Cin, ts), w_ref: (Cout, Cin), b_ref: (Cout, 1), o_ref: (1, Cout, ts)
    x = x_ref[0]                                                        # (Cin, ts)
    acc = jnp.dot(w_ref[...], x, preferred_element_type=jnp.float32)   # (Cout, ts) f32
    o_ref[0] = (acc + b_ref[...]).astype(o_ref.dtype)


def _round_up(a: int, b: int) -> int:
    return ((a + b - 1) // b) * b


@functools.partial(jax.jit, static_argnames=("tile_spatial",))
def outconv_forward(x_nchw, weight, bias, *, tile_spatial=512):
    """1x1 conv forward, matches nn.Conv2d(in_channels, out_channels, kernel_size=1).

    x_nchw : (N, Cin, H, W)
    weight : (Cout, Cin, 1, 1)   -- PyTorch Conv2d layout
    bias   : (Cout,)
    returns: (N, Cout, H, W)
    """
    N, Cin, H, W = x_nchw.shape
    Cout = weight.shape[0]
    HW = H * W

    # Lane-dense spatial tile: multiple of 128, no larger than the (padded)
    # spatial extent. Large tiles amortize the ~0.35us per-grid-step overhead.
    # With tiny Cin/Cout the double-buffered VMEM footprint of even ts=2048 is
    # well under the scoped default on v5e/v6e/v7x, so no vmem_limit_bytes
    # override is needed; for very large Cin on v7x (64 MiB VMEM) halve ts.
    ts = min(tile_spatial, _round_up(HW, 128))
    padded_HW = _round_up(HW, ts)

    # NCHW-native: free reshapes, no wrapper transposes.
    x_flat = x_nchw.reshape(N, Cin, HW)
    if padded_HW != HW:
        # Remainder handling: pad spatial up to a tile multiple, slice back after.
        x_flat = jnp.pad(x_flat, ((0, 0), (0, 0), (0, padded_HW - HW)))
    w_mat = weight.reshape(Cout, Cin)          # (Cout, Cin), resident in VMEM
    b_col = bias.reshape(Cout, 1)              # broadcasts over spatial lanes

    grid = (N, padded_HW // ts)

    itemsize = jnp.dtype(x_nchw.dtype).itemsize
    out_flat = pl.pallas_call(
        _outconv_kernel,
        out_shape=jax.ShapeDtypeStruct((N, Cout, padded_HW), x_nchw.dtype),
        grid_spec=pltpu.PrefetchScalarGridSpec(
            num_scalar_prefetch=0,
            grid=grid,
            in_specs=[
                pl.BlockSpec((1, Cin, ts), lambda n, s: (n, 0, s)),   # activation tile
                pl.BlockSpec((Cout, Cin), lambda n, s: (0, 0)),       # resident weight
                pl.BlockSpec((Cout, 1), lambda n, s: (0, 0)),         # resident bias
            ],
            out_specs=pl.BlockSpec((1, Cout, ts), lambda n, s: (n, 0, s)),
        ),
        compiler_params=pltpu.CompilerParams(
            # Both grid axes are fully independent -> shards across the 2 TCs on v7x,
            # harmless on single-TC v5e/v6e.
            dimension_semantics=("parallel", "parallel"),
        ),
        cost_estimate=pl.CostEstimate(
            flops=2 * N * HW * Cin * Cout,
            bytes_accessed=itemsize * (N * HW * (Cin + Cout) + Cin * Cout + Cout),
            transcendentals=0,
        ),
    )(x_flat, w_mat, b_col)

    if padded_HW != HW:
        out_flat = out_flat[:, :, :HW]
    return out_flat.reshape(N, Cout, H, W)


if __name__ == "__main__":
    # Deterministic synthetic parameters/inputs (no checkpoint loading).
    N, Cin, Cout, H, W = 2, 4, 8, 16, 16

    key = jax.random.PRNGKey(0)
    kx, kw, kb = jax.random.split(key, 3)

    x = jax.random.normal(kx, (N, Cin, H, W), dtype=jnp.float32)
    # Roughly mimic PyTorch Conv2d default init scale (uniform in +-1/sqrt(fan_in)).
    bound = 1.0 / jnp.sqrt(jnp.float32(Cin))
    weight = jax.random.uniform(kw, (Cout, Cin, 1, 1), jnp.float32, -bound, bound)
    bias = jax.random.uniform(kb, (Cout,), jnp.float32, -bound, bound)

    out = outconv_forward(x, weight, bias)
    jax.block_until_ready(out)

    # Correctness check against plain-JAX reference (same math as nn.Conv2d k=1).
    ref = jnp.einsum("nchw,oc->nohw", x, weight.reshape(Cout, Cin)) + bias[None, :, None, None]
    assert out.shape == (N, Cout, H, W)
    assert jnp.allclose(out, ref, atol=1e-5, rtol=1e-5)

    print("KERNEL_OK")
</pallas_src>

<mosaic_0001>
module attributes {stable_mosaic.version = 11 : i64} {
  func.func @_outconv_kernel(%arg0: i32, %arg1: i32, %arg2: memref<1x4x256xf32, #tpu.memory_space<vmem>>, %arg3: memref<8x4xf32, #tpu.memory_space<vmem>>, %arg4: memref<8x1xf32, #tpu.memory_space<vmem>>, %arg5: memref<1x8x256xf32, #tpu.memory_space<vmem>>) attributes {dimension_semantics = [#tpu.dimension_semantics<parallel>, #tpu.dimension_semantics<parallel>], iteration_bounds = array<i64: 2, 1>, scalar_prefetch = 0 : i64, scratch_operands = 0 : i64, tpu.core_type = #tpu.core_type<tc>, window_params = [{transform_indices = @transform_0, window_bounds = array<i64: 1, 4, 256>}, {pipeline_mode = #tpu.pipeline_mode<synchronous>, transform_indices = @transform_1, window_bounds = array<i64: 8, 4>}, {pipeline_mode = #tpu.pipeline_mode<synchronous>, transform_indices = @transform_2, window_bounds = array<i64: 8, 1>}, {transform_indices = @transform_3, window_bounds = array<i64: 1, 8, 256>}]} {
    %c0 = arith.constant 0 : index
    %c0_0 = arith.constant 0 : index
    %c0_1 = arith.constant 0 : index
    %0 = vector.load %arg2[%c0, %c0_0, %c0_1] : memref<1x4x256xf32, #tpu.memory_space<vmem>>, vector<1x4x256xf32>
    %1 = vector.shape_cast %0 : vector<1x4x256xf32> to vector<4x256xf32>
    %c0_2 = arith.constant 0 : index
    %c0_3 = arith.constant 0 : index
    %2 = vector.load %arg3[%c0_2, %c0_3] : memref<8x4xf32, #tpu.memory_space<vmem>>, vector<8x4xf32>
    %cst = arith.constant dense<0.000000e+00> : vector<8x256xf32>
    %3 = tpu.matmul %2, %1, %cst {dimension_numbers = #tpu.dot_dimension_numbers<[1], [0], [0], [1], [0, 0, 1, 1], [], []>} : vector<8x4xf32>, vector<4x256xf32>, vector<8x256xf32> -> vector<8x256xf32>
    %c0_4 = arith.constant 0 : index
    %c0_5 = arith.constant 0 : index
    %4 = vector.load %arg4[%c0_4, %c0_5] : memref<8x1xf32, #tpu.memory_space<vmem>>, vector<8x1xf32>
    %5 = vector.broadcast %4 : vector<8x1xf32> to vector<8x256xf32>
    %6 = arith.addf %3, %5 : vector<8x256xf32>
    %c0_6 = arith.constant 0 : index
    %c0_7 = arith.constant 0 : index
    %c0_8 = arith.constant 0 : index
    %7 = vector.load %arg5[%c0_6, %c0_7, %c0_8] : memref<1x8x256xf32, #tpu.memory_space<vmem>>, vector<1x8x256xf32>
    %8 = vector.shape_cast %7 : vector<1x8x256xf32> to vector<8x256xf32>
    %9 = vector.shape_cast %6 : vector<8x256xf32> to vector<1x8x256xf32>
    tpu.vector_store %arg5[%c0_6, %c0_7, %c0_8], %9 {strides = array<i32>} : memref<1x8x256xf32, #tpu.memory_space<vmem>>, vector<1x8x256xf32>,
    return
  }
  func.func @transform_0(%arg0: i32, %arg1: i32) -> (i32, i32, i32) {
    %c0_i32 = arith.constant 0 : i32
    %c0_i32_0 = arith.constant 0 : i32
    return %arg0, %c0_i32, %arg1 : i32, i32, i32
  }
  func.func @transform_1(%arg0: i32, %arg1: i32) -> (i32, i32) {
    %c0_i32 = arith.constant 0 : i32
    %c0_i32_0 = arith.constant 0 : i32
    %c0_i32_1 = arith.constant 0 : i32
    return %c0_i32, %c0_i32_0 : i32, i32
  }
  func.func @transform_2(%arg0: i32, %arg1: i32) -> (i32, i32) {
    %c0_i32 = arith.constant 0 : i32
    %c0_i32_0 = arith.constant 0 : i32
    %c0_i32_1 = arith.constant 0 : i32
    return %c0_i32, %c0_i32_0 : i32, i32
  }
  func.func @transform_3(%arg0: i32, %arg1: i32) -> (i32, i32, i32) {
    %c0_i32 = arith.constant 0 : i32
    %c0_i32_0 = arith.constant 0 : i32
    return %arg0, %c0_i32, %arg1 : i32, i32, i32
  }
}

</mosaic_0001>

<bundles_post_ra>
// kernel: outconv_forward.1
= control target key start
LH: loop header
LB: loop body
LE: loop exit
PB: predicated region body
PF: predicated region fallthrough
CT: control target
= control target key end

     0   :  { %s448_s12 = smov 0   ;;  %s450_s13 = smov 0   ;;  %s487_s0 = inlined_call_operand.vmem [shape: f32[2,4,256], index: 0, kind: input, shape index: {}]   ;;  %s488_s1 = inlined_call_operand.vmem [shape: f32[8,4], index: 1, kind: input, shape index: {}]   ;;  %s489_s2 = inlined_call_operand.vmem [shape: f32[8,1], index: 2, kind: input, shape index: {}]   ;;  %s490_s3 = inlined_call_operand.vmem [shape: f32[2,8,256], index: 3, kind: output, shape index: {}]  }
   0x1   :  { %s452_s14 = smov 0  }
   0x2 LB: > { %s25_s15 = sadd.s32 1, %s421_s13  ;;  %p364_p0 = scmp.ge.s32.totalorder %s425_s14, 1  ;;  %s425_s14 = sphi %s452_s14, %s13_s14   ;;  %s421_s13 = sphi %s450_s13, %s492_s13   ;;  %s417_s12 = sphi %s448_s12, %s491_s12  }
   0x3   : > { %p27_p1 = scmp.ge.s32.totalorder %s25_s15, 2  ;;  %p158_p2 = scmp.lt.s32.totalorder %s425_s14, 3 }
   0x5   : > { %s494_s15 = smov (%p27_p1, %s25_s15), 0  ;;  %p159_p3 = pnand %p364_p0, %p158_p2 }
   0x6   : > { %p191_p4 = scmp.lt.s32.totalorder (!%p159_p3), %s417_s12, 1 }
   0x7   : > { %162 = sbr.rel (%p159_p3) target bundleno = 155 (0x9b), region = 32 }
   0xc   : > { %v212_v0 = vld [vmem:[%s489_s2] sm:$0xff]  ;;  %v427_v1 = vmov 0   ;;  %s496_s12 = smov (!%p191_p4, %s417_s12), 1  ;;  %vm226_vm0 = vcmask 1043456   ;;  %vm222_vm1 = vcmask 31744  }
   0xd   : > { %402 = vset.pattern.permute.xlu0 %v427_v1  ;;  %s375_s18 = sshll.u32 %s496_s12, 3  ;;  %v211_v3 = vld [vmem:[%s488_s1] sm:$0xff]  ;;  %s376_s24 = sshll.u32 %s496_s12, 4 }
   0xe   : > { %215 = vperm.xlu0 %402, %v212_v0   ;;  %s198_s21 = scalar_lea.vmem %s487_s0, %s375_s18  ;;  %s208_s27 = scalar_lea.vmem %s490_s3, %s376_s24 }
   0xf   : > { %v210_v2 = vld [vmem:[%s198_s21] sm:$0xff] }
  0x10   : > { %219 = vst [vmem:[#allocation1] ss:$2 sm:$0xff] %v210_v2 }
  0x17   : > { %v220_v4 = vld.sshfl [vmem:[#allocation1] sm:$0xff pattern:$0x75316420]  ;;  %v221_v5 = vld.sshfl [vmem:[#allocation1 + $0x8] sm:$0xff pattern:$0x75316420] }
  0x18   : > { %369 = vmatpush.msk.msra.mxu0 %vm226_vm0, %v220_v4  ;;  %371 = vmatpush.msk.msra.mxu1 %vm226_vm0, %v221_v5 }
  0x19   : > { %370 = vmatmul.msk.f32.vlgmr.msra.gmra.mxu0 %vm222_vm1, %v211_v3  ;;  %372 = vmatmul.msk.f32.vlgmr.msra.gmra.mxu1 %vm222_vm1, %v211_v3 }
  0x80   : > { %v216_v6 = vpop.permute.xlu0 %215 }
  0x96   : > { %v248_v7 = vpop.f32.mrf.mxu0  ;;  %v268_v8 = vpop.f32.mrf.mxu1 }
  0x97   : > { %v249_v9 = vadd.f32 %v248_v7, %v216_v6  ;;  %v269_v10 = vadd.f32 %v268_v8, %v216_v6 }
  0x99   : > { %271 = vst [vmem:[%s208_s27] sm:$0xff] %v249_v9 }
  0x9a   : > { %272 = vst [vmem:[%s208_s27 + $0x8] sm:$0xff] %v269_v10 }
  0x9b PF: > { %s13_s14 = sadd.s32 1, %s425_s14   ;;  %s491_s12 = smov %s421_s13 }
  0x9c   : > { %p10_p5 = scmp.ge.s32.totalorder %s13_s14, 4   ;;  %s492_s13 = smov %s494_s15 }
  0x9e   :  { %12 = sbr.rel (!%p10_p5) target bundleno = 2 (0x2), region = 62 }

</bundles_post_ra>
